<compile_context>
chip_gen: v7x
topology: tpu7x:2x2x1
jax: 0.10.0
libtpu: 0.0.40
codegen_flags: <defaults>
</compile_context>

<pallas_src>
import jax
import jax.numpy as jnp
import numpy as np
from jax.experimental import pallas as pl
from jax.experimental.pallas import tpu as pltpu

_INV_SQRT2 = 0.7071067811865476


def _round_up(x, m):
    return ((x + m - 1) // m) * m


def _gelu_exact(x):
    # nn.GELU() default = exact (erf) formulation, evaluated in f32.
    # TODO(synk): tanh-approx GELU would route to the EUP slot (cheaper epilogue) at a
    # tiny numerical difference from the PyTorch reference.
    return 0.5 * x * (1.0 + jax.lax.erf(x * _INV_SQRT2))


# ----------------------------- projector kernel -----------------------------

def _projector_kernel(x_ref, w1_ref, b1_ref, w2_ref, b2_ref, o_ref):
    # Linear(E->D) ; GELU ; Linear(D->D). bf16 MXU operands, f32 accumulate + epilogue.
    h = jnp.dot(x_ref[...], w1_ref[...], preferred_element_type=jnp.float32)
    h = _gelu_exact(h + b1_ref[...])
    y = jnp.dot(h.astype(w2_ref.dtype), w2_ref[...], preferred_element_type=jnp.float32)
    o_ref[...] = (y + b2_ref[...]).astype(o_ref.dtype)


def projector_pallas(x, w1, b1, w2, b2, *, tm=256, out_dtype=jnp.float32):
    """x: [L, E] -> [L, D].  Tiled over tokens so the software pipeline prefetches tile
    i+1 while computing tile i; w1/b1/w2/b2 stay VMEM-resident (index_map -> (0, 0))."""
    L, E = x.shape
    D = w1.shape[1]
    tm = min(tm, _round_up(L, 8))
    Lp = _round_up(L, tm)

    xb = x.astype(jnp.bfloat16)
    if Lp != L:
        xb = jnp.pad(xb, ((0, Lp - L), (0, 0)))
    w1b = w1.astype(jnp.bfloat16)
    w2b = w2.astype(jnp.bfloat16)
    b1f = b1.astype(jnp.float32).reshape(1, D)
    b2f = b2.astype(jnp.float32).reshape(1, D)

    # TODO(synk): for very large decoder_hidden_size (e.g. 4096 on v7x's 64 MiB VMEM),
    # additionally tile the second matmul's output-N dimension instead of keeping the
    # whole [D, D] weight block resident.
    bytes_accessed = (xb.size * 2 + w1b.size * 2 + w2b.size * 2
                      + b1f.size * 4 + b2f.size * 4 + Lp * D * 4)

    out = pl.pallas_call(
        _projector_kernel,
        out_shape=jax.ShapeDtypeStruct((Lp, D), out_dtype),
        grid_spec=pltpu.PrefetchScalarGridSpec(
            num_scalar_prefetch=0,
            grid=(Lp // tm,),
            in_specs=[
                pl.BlockSpec((tm, E), lambda i: (i, 0)),
                pl.BlockSpec((E, D), lambda i: (0, 0)),
                pl.BlockSpec((1, D), lambda i: (0, 0)),
                pl.BlockSpec((D, D), lambda i: (0, 0)),
                pl.BlockSpec((1, D), lambda i: (0, 0)),
            ],
            out_specs=pl.BlockSpec((tm, D), lambda i: (i, 0)),
        ),
        compiler_params=pltpu.CompilerParams(
            dimension_semantics=("parallel",),
            vmem_limit_bytes=48 * 1024 * 1024,
        ),
        cost_estimate=pl.CostEstimate(
            flops=2 * Lp * (E * D + D * D),
            transcendentals=Lp * D,
            bytes_accessed=bytes_accessed,
        ),
    )(xb, w1b, b1f, w2b, b2f)
    return out[:L]


# ------------------------- scatter merge kernel ------------------------------

def _scatter_merge_kernel(pos_ref, table_ref, text_hbm_ref, o_ref):
    # The output buffer is aliased with the decoder token-embedding buffer, so rows that
    # are never visited keep the text embeddings.  Each grid step writes the i-th
    # projected table row into placeholder row pos_ref[i] (selected by the output
    # BlockSpec's data-dependent index_map).
    del pos_ref, text_hbm_ref  # positions are consumed by the index_map only
    o_ref[...] = table_ref[...].astype(o_ref.dtype)


def merge_multimodal_pallas(placeholder_pos, table_rows, text_embeds):
    """placeholder_pos: [L] int32, table_rows: [L, D], text_embeds: [S, D] -> [S, D].

    Scatter-style merge_multimodal_embeddings: only the L placeholder rows are written,
    in place, into the aliased text-embedding buffer."""
    L, D = table_rows.shape
    S, _ = text_embeds.shape
    # Reshape to [*, 1, D] so the last two block dims equal the full array dims
    # (lane-dense, no (8,128) padding issues for single-row blocks).
    table3 = table_rows.reshape(L, 1, D)
    text3 = text_embeds.reshape(S, 1, D)

    merged = pl.pallas_call(
        _scatter_merge_kernel,
        out_shape=jax.ShapeDtypeStruct((S, 1, D), text_embeds.dtype),
        grid_spec=pltpu.PrefetchScalarGridSpec(
            num_scalar_prefetch=1,                        # placeholder positions -> SMEM
            grid=(L,),
            in_specs=[
                pl.BlockSpec((1, 1, D), lambda i, pos: (i, 0, 0)),
                pl.BlockSpec(memory_space=pl.ANY),        # aliased text buffer (never read)
            ],
            out_specs=pl.BlockSpec((1, 1, D), lambda i, pos: (pos[i], 0, 0)),
        ),
        compiler_params=pltpu.CompilerParams(
            dimension_semantics=("arbitrary",),
        ),
        cost_estimate=pl.CostEstimate(
            flops=0,
            transcendentals=0,
            bytes_accessed=2 * L * D * 4,
        ),
        # inputs = (placeholder_pos, table3, text3); text3 (index 2, counting the scalar
        # prefetch operand) aliases output 0 -> in-place update of the embedding buffer.
        input_output_aliases={2: 0},
    )(placeholder_pos, table3, text3)
    return merged.reshape(S, D)


# ------------------------------ model wrapper --------------------------------

class TableGPTMarkupForCausalLMPallas:
    """Synthetic-parameter reimplementation of TableGPTMarkupForCausalLM.forward()."""

    def __init__(self, key, *, enc_vocab, dec_vocab, enc_hidden, dec_hidden,
                 placeholder_token_id, mlp_depth=2):
        assert mlp_depth == 2, "synthetic config uses mlp_depth=2 (Linear, GELU, Linear)"
        self.placeholder_token_id = placeholder_token_id
        k = jax.random.split(key, 6)
        scale = 0.02
        # TODO(synk): CodeT5pModel encoder is an external HF submodule; stubbed as an
        # embedding lookup producing last_hidden_state of shape [1, L_enc, enc_hidden].
        self.enc_embed_table = scale * jax.random.normal(k[0], (enc_vocab, enc_hidden), jnp.float32)
        # language_model.model.get_input_embeddings -> decoder token embedding table.
        self.dec_embed_table = scale * jax.random.normal(k[1], (dec_vocab, dec_hidden), jnp.float32)
        # projector parameters, stored [in_features, out_features] so matmuls are x @ W.
        self.w1 = scale * jax.random.normal(k[2], (enc_hidden, dec_hidden), jnp.float32)
        self.b1 = scale * jax.random.normal(k[3], (1, dec_hidden), jnp.float32)
        self.w2 = scale * jax.random.normal(k[4], (dec_hidden, dec_hidden), jnp.float32)
        self.b2 = scale * jax.random.normal(k[5], (1, dec_hidden), jnp.float32)

    def forward(self, input_ids, positions=None, kv_caches=None, attn_metadata=None,
                intermediate_tensors=None, *, table=None):
        if table is not None:
            # --- encoder (stub): last_hidden_state [1, L_enc, E] ---
            table_embeds = jnp.take(self.enc_embed_table, table, axis=0)
            L_enc, E = table_embeds.shape[-2], table_embeds.shape[-1]

            # --- projector (Pallas) ---
            cur_table_embeds = projector_pallas(
                table_embeds.reshape(L_enc, E), self.w1, self.b1, self.w2, self.b2)

            # --- decoder input embeddings (input_ids.clamp(min=0) lookup) ---
            cur_input_embeds = jnp.take(self.dec_embed_table,
                                        jnp.maximum(input_ids, 0), axis=0)

            # --- merge_multimodal_embeddings (Pallas scatter into aliased buffer) ---
            # NOTE: the reference asserts the number of placeholder tokens equals the
            # number of projected rows (L_enc); the k-th placeholder gets the k-th row.
            ph_pos = jnp.nonzero(input_ids == self.placeholder_token_id,
                                 size=L_enc, fill_value=0)[0].astype(jnp.int32)
            inputs_embeds = merge_multimodal_pallas(ph_pos, cur_table_embeds,
                                                    cur_input_embeds)
        else:
            inputs_embeds = jnp.take(self.dec_embed_table,
                                     jnp.maximum(input_ids, 0), axis=0)

        # TODO(synk): language_model is an external vLLM-registered decoder stack (not
        # defined in this module); hidden_states are its output on inputs_embeds.
        hidden_states = inputs_embeds
        return hidden_states


# --------------------------------- main ---------------------------------------

if __name__ == "__main__":
    # TPU-tile-friendly demo shapes: hidden sizes multiple of 128 (lane), lengths of 8.
    ENC_VOCAB = 256
    DEC_VOCAB = 256
    ENC_HIDDEN = 128     # encoder_hidden_size
    DEC_HIDDEN = 128     # decoder_hidden_size
    L_ENC = 16           # encoder_max_length (table token length)
    SEQ = 64             # decoder sequence length
    PLACEHOLDER_ID = 5   # config.placeholder_token_id

    key = jax.random.PRNGKey(0)
    k_model, k_table, k_ids = jax.random.split(key, 3)

    model = TableGPTMarkupForCausalLMPallas(
        k_model,
        enc_vocab=ENC_VOCAB, dec_vocab=DEC_VOCAB,
        enc_hidden=ENC_HIDDEN, dec_hidden=DEC_HIDDEN,
        placeholder_token_id=PLACEHOLDER_ID, mlp_depth=2)

    # Table-encoder token ids: [1, L_enc]
    table_ids = jax.random.randint(k_table, (1, L_ENC), 0, ENC_VOCAB, dtype=jnp.int32)

    # Decoder prompt with exactly L_ENC placeholder tokens and one -1 (exercises clamp(min=0)).
    input_ids = jax.random.randint(k_ids, (SEQ,), 6, DEC_VOCAB, dtype=jnp.int32)
    input_ids = input_ids.at[8:8 + L_ENC].set(PLACEHOLDER_ID)
    input_ids = input_ids.at[0].set(-1)
    positions = jnp.arange(SEQ, dtype=jnp.int32)

    hidden_states = model.forward(input_ids, positions, kv_caches=None,
                                  attn_metadata=None, table=table_ids)
    hidden_states = jax.block_until_ready(hidden_states)

    assert hidden_states.shape == (SEQ, DEC_HIDDEN)
    assert hidden_states.dtype == jnp.float32

    # --- light correctness check against a pure-jnp reference of the same math ---
    enc = jnp.take(model.enc_embed_table, table_ids, axis=0).reshape(L_ENC, ENC_HIDDEN)
    h_ref = jnp.dot(enc.astype(jnp.bfloat16), model.w1.astype(jnp.bfloat16),
                    preferred_element_type=jnp.float32) + model.b1
    h_ref = 0.5 * h_ref * (1.0 + jax.lax.erf(h_ref * _INV_SQRT2))
    proj_ref = jnp.dot(h_ref.astype(jnp.bfloat16), model.w2.astype(jnp.bfloat16),
                       preferred_element_type=jnp.float32) + model.b2
    text_ref = jnp.take(model.dec_embed_table, jnp.maximum(input_ids, 0), axis=0)
    merged_ref = np.array(text_ref)
    ph = np.where(np.asarray(input_ids) == PLACEHOLDER_ID)[0]
    merged_ref[ph] = np.asarray(proj_ref)
    np.testing.assert_allclose(np.asarray(hidden_states), merged_ref, rtol=2e-2, atol=2e-3)

    print("KERNEL_OK")
</pallas_src>

<mosaic_0001>
module attributes {stable_mosaic.version = 11 : i64} {
  func.func @_projector_kernel(%arg0: i32, %arg1: memref<16x128xbf16, #tpu.memory_space<vmem>>, %arg2: memref<128x128xbf16, #tpu.memory_space<vmem>>, %arg3: memref<1x128xf32, #tpu.memory_space<vmem>>, %arg4: memref<128x128xbf16, #tpu.memory_space<vmem>>, %arg5: memref<1x128xf32, #tpu.memory_space<vmem>>, %arg6: memref<16x128xf32, #tpu.memory_space<vmem>>) attributes {dimension_semantics = [#tpu.dimension_semantics<parallel>], iteration_bounds = array<i64: 1>, scalar_prefetch = 0 : i64, scratch_operands = 0 : i64, tpu.core_type = #tpu.core_type<tc>, window_params = [{transform_indices = @transform_0, window_bounds = array<i64: 16, 128>}, {pipeline_mode = #tpu.pipeline_mode<synchronous>, transform_indices = @transform_1, window_bounds = array<i64: 128, 128>}, {pipeline_mode = #tpu.pipeline_mode<synchronous>, transform_indices = @transform_2, window_bounds = array<i64: 1, 128>}, {pipeline_mode = #tpu.pipeline_mode<synchronous>, transform_indices = @transform_3, window_bounds = array<i64: 128, 128>}, {pipeline_mode = #tpu.pipeline_mode<synchronous>, transform_indices = @transform_4, window_bounds = array<i64: 1, 128>}, {transform_indices = @transform_5, window_bounds = array<i64: 16, 128>}]} {
    %c0 = arith.constant 0 : index
    %c0_0 = arith.constant 0 : index
    %0 = vector.load %arg1[%c0, %c0_0] : memref<16x128xbf16, #tpu.memory_space<vmem>>, vector<16x128xbf16>
    %c0_1 = arith.constant 0 : index
    %c0_2 = arith.constant 0 : index
    %1 = vector.load %arg2[%c0_1, %c0_2] : memref<128x128xbf16, #tpu.memory_space<vmem>>, vector<128x128xbf16>
    %cst = arith.constant dense<0.000000e+00> : vector<16x128xf32>
    %2 = tpu.matmul %0, %1, %cst {dimension_numbers = #tpu.dot_dimension_numbers<[1], [0], [0], [1], [0, 0, 1, 1], [], []>} : vector<16x128xbf16>, vector<128x128xbf16>, vector<16x128xf32> -> vector<16x128xf32>
    %c0_3 = arith.constant 0 : index
    %c0_4 = arith.constant 0 : index
    %3 = vector.load %arg3[%c0_3, %c0_4] : memref<1x128xf32, #tpu.memory_space<vmem>>, vector<1x128xf32>
    %4 = vector.broadcast %3 : vector<1x128xf32> to vector<16x128xf32>
    %5 = arith.addf %2, %4 : vector<16x128xf32>
    %cst_5 = arith.constant 5.000000e-01 : f32
    %6 = vector.broadcast %cst_5 : f32 to vector<16x128xf32>
    %7 = arith.mulf %6, %5 : vector<16x128xf32>
    %cst_6 = arith.constant 0.707106769 : f32
    %8 = vector.broadcast %cst_6 : f32 to vector<16x128xf32>
    %9 = arith.mulf %5, %8 : vector<16x128xf32>
    %10 = math.erf %9 : vector<16x128xf32>
    %cst_7 = arith.constant 1.000000e+00 : f32
    %11 = vector.broadcast %cst_7 : f32 to vector<16x128xf32>
    %12 = arith.addf %11, %10 : vector<16x128xf32>
    %13 = arith.mulf %7, %12 : vector<16x128xf32>
    %14 = arith.truncf %13 : vector<16x128xf32> to vector<16x128xbf16>
    %c0_8 = arith.constant 0 : index
    %c0_9 = arith.constant 0 : index
    %15 = vector.load %arg4[%c0_8, %c0_9] : memref<128x128xbf16, #tpu.memory_space<vmem>>, vector<128x128xbf16>
    %cst_10 = arith.constant dense<0.000000e+00> : vector<16x128xf32>
    %16 = tpu.matmul %14, %15, %cst_10 {dimension_numbers = #tpu.dot_dimension_numbers<[1], [0], [0], [1], [0, 0, 1, 1], [], []>} : vector<16x128xbf16>, vector<128x128xbf16>, vector<16x128xf32> -> vector<16x128xf32>
    %c0_11 = arith.constant 0 : index
    %c0_12 = arith.constant 0 : index
    %17 = vector.load %arg5[%c0_11, %c0_12] : memref<1x128xf32, #tpu.memory_space<vmem>>, vector<1x128xf32>
    %18 = vector.broadcast %17 : vector<1x128xf32> to vector<16x128xf32>
    %19 = arith.addf %16, %18 : vector<16x128xf32>
    %c0_13 = arith.constant 0 : index
    %c0_14 = arith.constant 0 : index
    %20 = vector.load %arg6[%c0_13, %c0_14] : memref<16x128xf32, #tpu.memory_space<vmem>>, vector<16x128xf32>
    tpu.vector_store %arg6[%c0_13, %c0_14], %19 {strides = array<i32>} : memref<16x128xf32, #tpu.memory_space<vmem>>, vector<16x128xf32>,
    return
  }
  func.func @transform_0(%arg0: i32) -> (i32, i32) {
    %c0_i32 = arith.constant 0 : i32
    %c0_i32_0 = arith.constant 0 : i32
    return %arg0, %c0_i32 : i32, i32
  }
  func.func @transform_1(%arg0: i32) -> (i32, i32) {
    %c0_i32 = arith.constant 0 : i32
    %c0_i32_0 = arith.constant 0 : i32
    %c0_i32_1 = arith.constant 0 : i32
    return %c0_i32, %c0_i32_0 : i32, i32
  }
  func.func @transform_2(%arg0: i32) -> (i32, i32) {
    %c0_i32 = arith.constant 0 : i32
    %c0_i32_0 = arith.constant 0 : i32
    %c0_i32_1 = arith.constant 0 : i32
    return %c0_i32, %c0_i32_0 : i32, i32
  }
  func.func @transform_3(%arg0: i32) -> (i32, i32) {
    %c0_i32 = arith.constant 0 : i32
    %c0_i32_0 = arith.constant 0 : i32
    %c0_i32_1 = arith.constant 0 : i32
    return %c0_i32, %c0_i32_0 : i32, i32
  }
  func.func @transform_4(%arg0: i32) -> (i32, i32) {
    %c0_i32 = arith.constant 0 : i32
    %c0_i32_0 = arith.constant 0 : i32
    %c0_i32_1 = arith.constant 0 : i32
    return %c0_i32, %c0_i32_0 : i32, i32
  }
  func.func @transform_5(%arg0: i32) -> (i32, i32) {
    %c0_i32 = arith.constant 0 : i32
    %c0_i32_0 = arith.constant 0 : i32
    return %arg0, %c0_i32 : i32, i32
  }
}

</mosaic_0001>

<bundles_post_ra>
// kernel: tpu_custom_call.1
= control target key start
LH: loop header
LB: loop body
LE: loop exit
PB: predicated region body
PF: predicated region fallthrough
CT: control target
= control target key end

     0   :  { %10 = vsyncpa [#allocation3], 0  ;;  %s638_s0 = inlined_call_operand.hbm [shape: bf16[16,128], index: 0, kind: input, shape index: {}]   ;;  %s639_s1 = inlined_call_operand.hbm [shape: bf16[128,128], index: 1, kind: input, shape index: {}]   ;;  %s640_s2 = inlined_call_operand.vmem [shape: f32[1,128], index: 2, kind: input, shape index: {}]   ;;  %s641_s3 = inlined_call_operand.hbm [shape: bf16[128,128], index: 3, kind: input, shape index: {}]   ;;  %s642_s4 = inlined_call_operand.vmem [shape: f32[1,128], index: 4, kind: input, shape index: {}]   ;;  %s643_s5 = inlined_call_operand.hbm [shape: f32[16,128], index: 5, kind: output, shape index: {}]  }
   0x1   :  { %11 = vsyncpa [#allocation6], 0 }
   0x2   :  { %12 = vsyncpa [#allocation4], 0  ;;  %s528_s18 = smov [#allocation5]   ;;  %s529_s20 = smov [#allocation2]  }
   0x3   :  { %s30_s19 = sshll.u32 %s528_s18, 4  ;;  %s18_s21 = sshll.u32 %s529_s20, 4  ;;  %s31_s19 = int_to_ptr.vmem [resolvable:$true] %s30_s19  ;;  %s568_s21 = int_to_ptr.vmem [resolvable:$true] %s18_s21 }
   0x4   :  { %s434_s24 = scalar_lea.hbm %s639_s1, 1024 }
   0x5   :  { %p435_p0 = scmp.ne.s32.totalorder %s639_s1, %s434_s24  ;;  %p438_p1 = scmp.lt.u32.totalorder %s434_s24, %s639_s1 }
   0x7   :  { %p440_p2 = pnand %p438_p1, %p435_p0 }
   0x9   :  { %443 = shalt.err (!%p440_p2)
}
   0xa   :  { %s444_s29 = scalar_lea.vmem %s31_s19, 1024  ;;  %p449_p4 = scmp.lt.s32.totalorder %s31_s19, %s31_s19 }
   0xb   :  { %p445_p3 = scmp.ne.s32.totalorder %s31_s19, %s444_s29  ;;  %p450_p5 = scmp.lt.s32.totalorder %s444_s29, %s444_s29 }
   0xd   :  { %p451_p6 = por %p450_p5, %p449_p4 }
   0xf   :  { %p452_p7 = pnand %p451_p6, %p445_p3 }
  0x11   :  { %455 = shalt.err (!%p452_p7)
}
  0x12   :  { %s530_s30 = smov 64   ;;  %s531_s6 = smov 4  }
  0x13   :  { %36 = dma.hbm_to_vmem [thread:$0]  %s639_s1, 1024, %s31_s19, [#allocation6], %s530_s30, %s530_s30, %s531_s6  }
  0x14   :  { %s456_s11 = scalar_lea.hbm %s638_s0, 128 }
  0x15   :  { %p457_p8 = scmp.ne.s32.totalorder %s638_s0, %s456_s11  ;;  %p460_p9 = scmp.lt.u32.totalorder %s456_s11, %s638_s0 }
  0x17   :  { %p462_p10 = pnand %p460_p9, %p457_p8 }
  0x19   :  { %465 = shalt.err (!%p462_p10)
}
  0x1a   :  { %s466_s16 = scalar_lea.vmem %s568_s21, 128  ;;  %p471_p12 = scmp.lt.s32.totalorder %s568_s21, %s568_s21 }
  0x1b   :  { %p467_p11 = scmp.ne.s32.totalorder %s568_s21, %s466_s16  ;;  %p472_p13 = scmp.lt.s32.totalorder %s466_s16, %s466_s16 }
  0x1d   :  { %p473_p0 = por %p472_p13, %p471_p12 }
  0x1f   :  { %p474_p1 = pnand %p473_p0, %p467_p11 }
  0x21   :  { %477 = shalt.err (!%p474_p1)
}
  0x22   :  { %24 = dma.hbm_to_vmem [thread:$0]  %s638_s0, 128, %s568_s21, [#allocation3], %s530_s30, %s530_s30, %s531_s6  }
  0x23   :  { %s532_s18 = smov [#allocation7]   ;;  %s478_s23 = scalar_lea.hbm %s641_s3, 1024 }
  0x24   :  { %s44_s19 = sshll.u32 %s532_s18, 4  ;;  %p479_p2 = scmp.ne.s32.totalorder %s641_s3, %s478_s23  ;;  %s45_s19 = int_to_ptr.vmem [resolvable:$true] %s44_s19 }
  0x25   :  { %p482_p3 = scmp.lt.u32.totalorder %s478_s23, %s641_s3 }
  0x27   :  { %p484_p4 = pnand %p482_p3, %p479_p2 }
  0x29   :  { %487 = shalt.err (!%p484_p4)
}
  0x2a   :  { %s488_s28 = scalar_lea.vmem %s45_s19, 1024  ;;  %p493_p6 = scmp.lt.s32.totalorder %s45_s19, %s45_s19 }
  0x2b   :  { %p489_p5 = scmp.ne.s32.totalorder %s45_s19, %s488_s28  ;;  %p494_p7 = scmp.lt.s32.totalorder %s488_s28, %s488_s28 }
  0x2d   :  { %p495_p8 = por %p494_p7, %p493_p6 }
  0x2f   :  { %p496_p9 = pnand %p495_p8, %p489_p5 }
  0x31   :  { %499 = shalt.err (!%p496_p9)
}
  0x32   :  { %50 = dma.hbm_to_vmem [thread:$0]  %s641_s3, 1024, %s45_s19, [#allocation6], %s530_s30, %s530_s30, %s531_s6  }
  0x33   :  { %522 = dma.done.wait [#allocation3], 128  }
  0x34   :  { %523 = vsyncadd [#allocation3], 4294967168 }
  0x35   :  { %524 = dma.done.wait [#allocation6], 2048  }
  0x36   :  { %525 = vsyncadd [#allocation6], 4294965248  ;;  %v533_v0 = vmov 0.0   ;;  %vm534_vm0 = vmmov 0   ;;  %v413_v1 = vld [vmem:[#allocation5] sm:$0xff]   ;;  %v414_v2 = vld [vmem:[#allocation5 + $0x8] sm:$0xff]  }
  0x37   :  { %363 = vmatprep.subr.bf16.mxu0 %v533_v0  ;;  %379 = vmatprep.mubr.msk.bf16.mxu0 %vm534_vm0, %v533_v0  ;;  %v415_v3 = vld [vmem:[#allocation5 + $0x10] sm:$0xff]   ;;  %v422_v4 = vld [vmem:[#allocation7] sm:$0xff]   ;;  %v416_v5 = vld [vmem:[#allocation5 + $0x18] sm:$0xff]   ;;  %s535_s6 = smov [#allocation8]  }
  0x38   :  { %383 = vmatprep.subr.bf16.mxu1 %v533_v0  ;;  %399 = vmatprep.mubr.msk.bf16.mxu1 %vm534_vm0, %v533_v0  ;;  %v423_v6 = vld [vmem:[#allocation7 + $0x8] sm:$0xff]   ;;  %v417_v7 = vld [vmem:[#allocation5 + $0x20] sm:$0xff]   ;;  %v419_v9 = vld [vmem:[#allocation5 + $0x30] sm:$0xff]   ;;  %s313_s7 = sshll.u32 %s535_s6, 4  ;;  %s314_s7 = int_to_ptr.vmem [resolvable:$true] %s313_s7 }
  0x39   :  { %364 = vmatpush3.bf16.msra.mxu0 %v413_v1  ;;  %384 = vmatpush3.bf16.msra.mxu1 %v422_v4  ;;  %v418_v8 = vld [vmem:[#allocation5 + $0x28] sm:$0xff]   ;;  %v420_v10 = vld [vmem:[#allocation5 + $0x38] sm:$0xff]   ;;  %v424_v12 = vld [vmem:[#allocation7 + $0x10] sm:$0xff]   ;;  %s500_s8 = scalar_lea.vmem %s314_s7, 256  ;;  %p505_p11 = scmp.lt.s32.totalorder %s314_s7, %s314_s7 }
  0x3a   :  { %365 = vmatprep.subr.bf16.mxu0 %v533_v0  ;;  %385 = vmatprep.subr.bf16.mxu1 %v533_v0  ;;  %v421_v11 = vld [vmem:[#allocation2] sm:$0xff]   ;;  %v426_v14 = vld [vmem:[#allocation7 + $0x20] sm:$0xff]   ;;  %v427_v15 = vld [vmem:[#allocation7 + $0x28] sm:$0xff]   ;;  %p501_p10 = scmp.ne.s32.totalorder %s314_s7, %s500_s8  ;;  %p506_p12 = scmp.lt.s32.totalorder %s500_s8, %s500_s8 }
  0x3b   :  { %v425_v13 = vld [vmem:[#allocation7 + $0x18] sm:$0xff]   ;;  %v428_v16 = vld [vmem:[#allocation7 + $0x30] sm:$0xff]  }
  0x3c   :  { %v429_v17 = vld [vmem:[#allocation7 + $0x38] sm:$0xff]   ;;  %p507_p13 = por %p506_p12, %p505_p11 }
  0x3d   :  { %366 = vmatpush3.bf16.msra.mxu0 %v414_v2  ;;  %386 = vmatpush3.bf16.msra.mxu1 %v423_v6  ;;  %v326_v18 = vld [vmem:[%s640_s2] ss:$0 sm:$0xff] }
  0x3e   :  { %367 = vmatprep.subr.bf16.mxu0 %v533_v0  ;;  %387 = vmatprep.subr.bf16.mxu1 %v533_v0  ;;  %v336_v36 = vld [vmem:[%s642_s4] ss:$0 sm:$0xff]  ;;  %p508_p0 = pnand %p507_p13, %p501_p10 }
  0x41   :  { %368 = vmatpush3.bf16.msra.mxu0 %v415_v3  ;;  %388 = vmatpush3.bf16.msra.mxu1 %v424_v12 }
  0x42   :  { %369 = vmatprep.subr.bf16.mxu0 %v533_v0  ;;  %389 = vmatprep.subr.bf16.mxu1 %v533_v0 }
  0x45   :  { %370 = vmatpush3.bf16.msra.mxu0 %v416_v5  ;;  %390 = vmatpush3.bf16.msra.mxu1 %v425_v13 }
  0x46   :  { %371 = vmatprep.subr.bf16.mxu0 %v533_v0  ;;  %391 = vmatprep.subr.bf16.mxu1 %v533_v0 }
  0x49   :  { %372 = vmatpush3.bf16.msra.mxu0 %v417_v7  ;;  %392 = vmatpush3.bf16.msra.mxu1 %v426_v14 }
  0x4a   :  { %373 = vmatprep.subr.bf16.mxu0 %v533_v0  ;;  %393 = vmatprep.subr.bf16.mxu1 %v533_v0 }
  0x4d   :  { %374 = vmatpush3.bf16.msra.mxu0 %v418_v8  ;;  %394 = vmatpush3.bf16.msra.mxu1 %v427_v15 }
  0x4e   :  { %375 = vmatprep.subr.bf16.mxu0 %v533_v0  ;;  %395 = vmatprep.subr.bf16.mxu1 %v533_v0 }
  0x51   :  { %376 = vmatpush3.bf16.msra.mxu0 %v419_v9  ;;  %396 = vmatpush3.bf16.msra.mxu1 %v428_v16 }
  0x52   :  { %377 = vmatprep.subr.bf16.mxu0 %v533_v0  ;;  %397 = vmatprep.subr.bf16.mxu1 %v533_v0 }
  0x55   :  { %378 = vmatpush3.bf16.msra.mxu0 %v420_v10  ;;  %398 = vmatpush3.bf16.msra.mxu1 %v429_v17 }
  0x58   :  { %380 = vmatmul.mubr.bf16.vlgmr.msra.gmra.mrb[0].mxu0 %v421_v11 }
 0x12b   :  { %v176_v19 = vpop.f32.mrb[0].mxu0 }
 0x12c   :  { %v177_v20 = vadd.f32 %v326_v18, %v176_v19  ;;  %v381_v21 = vpop.f32.mrb[1].mxu0 }
 0x12d   :  { %v179_v22 = vpop.f32.mrb[2].mxu0 }
 0x12e   :  { %v185_v23 = vmul.f32 0.70710677, %v177_v20  ;;  %v180_v24 = vadd.f32 %v326_v18, %v179_v22  ;;  %v382_v25 = vpop.f32.mrb[3].mxu0  ;;  %v183_v30 = vmul.f32 0.5, %v177_v20 }
 0x130   :  { %430 = verf.f32 %v185_v23  ;;  %v186_v26 = vmul.f32 0.70710677, %v180_v24  ;;  %v184_v31 = vmul.f32 0.5, %v180_v24 }
 0x132   :  { %432 = verf.f32 %v186_v26 }
 0x13a   :  { %v431_v27 = vpop.eup %430 }
 0x13b   :  { %v189_v28 = vadd.f32 1.0, %v431_v27 }
 0x13c   :  { %v433_v29 = vpop.eup %432 }
 0x13d   :  { %v190_v32 = vadd.f32 1.0, %v433_v29  ;;  %v191_v33 = vmul.f32 %v189_v28, %v183_v30 }
 0x13f   :  { %v192_v34 = vmul.f32 %v190_v32, %v184_v31 }
 0x141   :  { %v193_v35 = vpack.c.bf16 %v192_v34, %v191_v33 }
 0x143   :  { %400 = vmatmul.mubr.bf16.vlgmr.msra.gmra.mrb[0].mxu1 %v193_v35 }
 0x216   :  { %v299_v37 = vpop.f32.mrb[0].mxu1 }
 0x217   :  { %v300_v38 = vadd.f32 %v336_v36, %v299_v37  ;;  %v401_v39 = vpop.f32.mrb[1].mxu1 }
 0x218   :  { %v302_v40 = vpop.f32.mrb[2].mxu1 }
 0x219   :  { %306 = vst [vmem:[#allocation8] sm:$0xff] %v300_v38  ;;  %v303_v41 = vadd.f32 %v336_v36, %v302_v40  ;;  %v402_v42 = vpop.f32.mrb[3].mxu1 }
 0x21b   :  { %307 = vst [vmem:[#allocation8 + $0x8] sm:$0xff] %v303_v41 }
 0x21c   :  { %511 = shalt.err (!%p508_p0)
}
 0x21d   :  { %s512_s10 = scalar_lea.hbm %s643_s5, 256 }
 0x21e   :  { %p513_p1 = scmp.ne.s32.totalorder %s643_s5, %s512_s10  ;;  %p516_p2 = scmp.lt.u32.totalorder %s512_s10, %s643_s5 }
 0x220   :  { %p518_p3 = pnand %p516_p2, %p513_p1 }
 0x222   :  { %521 = shalt.err (!%p518_p3)
}
 0x223   :  { %s536_s15 = smov 128   ;;  %s537_s16 = smov 8  }
 0x224   :  { %319 = dma.vmem_to_hbm [thread:$0]  %s314_s7, 256, %s643_s5, [#allocation4], %s536_s15, %s536_s15, %s537_s16  }
 0x225   :  { %526 = dma.done.wait [#allocation4], 256  }
 0x226   :  { %527 = vsyncadd [#allocation4], 4294967040 }
 0x227   :  { %323 = vsyncpa [#allocation3], 1 }
 0x228   :  { %324 = vsyncpa [#allocation6], 1 }
 0x229   :  { %325 = vsyncpa [#allocation4], 1 }

</bundles_post_ra>
